<compile_context>
chip_gen: v5e
topology: v5e:2x2
jax: 0.10.0
libtpu: 0.0.40
codegen_flags: <defaults>
</compile_context>

<pallas_src>
import math
import jax
import jax.numpy as jnp
from jax.experimental import pallas as pl
from jax.experimental.pallas import tpu as pltpu

_MIB = 1024 * 1024


# --------------------------- kernels ---------------------------------------

def _linear_kernel_acc(x_ref, w_ref, b_ref, o_ref, acc_ref):
    """Low-precision output: accumulate in an f32 VMEM scratch across K."""
    k = pl.program_id(2)

    @pl.when(k == 0)
    def _():
        acc_ref[...] = jnp.zeros_like(acc_ref)

    acc_ref[...] += jnp.dot(
        x_ref[...], w_ref[...], preferred_element_type=jnp.float32
    )

    @pl.when(k == pl.num_programs(2) - 1)
    def _():
        o_ref[...] = (acc_ref[...] + b_ref[...]).astype(o_ref.dtype)


def _linear_kernel_f32out(x_ref, w_ref, b_ref, o_ref):
    """f32 output: the output tile is resident across the K axis (its block
    index ignores k), so accumulate directly into it -- no scratch, no final
    copy.  Bias is written once at k == 0."""
    k = pl.program_id(2)

    @pl.when(k == 0)
    def _():
        o_ref[...] = jnp.broadcast_to(b_ref[...], o_ref.shape).astype(o_ref.dtype)

    o_ref[...] += jnp.dot(
        x_ref[...], w_ref[...], preferred_element_type=jnp.float32
    )


# --------------------------- helpers ----------------------------------------

def _round_up(a, b):
    return ((a + b - 1) // b) * b


def _sublane(dtype):
    # native sublane multiple: f32 -> 8, bf16 -> 16, int8/fp8 -> 32
    return max(8, 32 // jnp.dtype(dtype).itemsize)


def _vmem_capacity_bytes():
    try:
        info = pltpu.get_tpu_info()
        cap = getattr(info, "vmem_capacity_bytes", None)
        if cap:
            return int(cap)
    except Exception:
        pass
    return 64 * _MIB  # conservative fallback (v7x per-TensorCore VMEM)


def _tile_footprint_bytes(tm, tn, tk, cd_size, out_size, use_scratch):
    # double-buffered x / W / out streams + bias + optional f32 accumulator
    f = (2 * tm * tk * cd_size      # x tiles
         + 2 * tk * tn * cd_size    # W tiles
         + 2 * tm * tn * out_size   # out tiles
         + 2 * tn * 4)              # bias
    if use_scratch:
        f += tm * tn * 4
    return f


def _default_tile_caps(cd_size, vmem_cap):
    """Generation-aware default tile caps (all multiples of 256)."""
    if vmem_cap >= 100 * _MIB:            # v5e / v6e (128 MiB physical VMEM)
        return (1024, 2048, 1024) if cd_size <= 2 else (512, 1024, 512)
    else:                                  # v7x (64 MiB per TensorCore)
        return (768, 1024, 1024) if cd_size <= 2 else (512, 512, 512)


def _pick_tile(dim, cap):
    """Tile for a lane(128)-constrained dim.

    Returns (tile, padded_dim).  Prefers: full dim (always legal), then the
    largest multiple-of-128 divisor <= cap (no padding), then cap + padding."""
    if dim <= cap:
        return dim, dim
    t = (cap // 128) * 128
    while t >= 128:
        if dim % t == 0:
            return t, dim
        t -= 128
    t = (cap // 128) * 128
    return t, _round_up(dim, t)


# --------------------------- wrapper ----------------------------------------

def pallas_linear(x, w_kn, bias=None, *, tm=None, tn=None, tk=None,
                  compute_dtype=None):
    """y = x @ w_kn + bias  (== nn.Linear forward with W stored as (K, N)).

    x:     (..., K) activations.
    w_kn:  (K, N)  weight, already transposed (and ideally already cast to the
           compute dtype) by init_linear_params -- no per-call weight passes.
    bias:  (N,) or None.
    compute_dtype: MXU input dtype (defaults to the weight's dtype).  f32
           accumulation is always used; the output keeps x's dtype.
    """
    *lead, K = x.shape
    Kw, N = w_kn.shape
    assert K == Kw, (K, Kw)
    M = int(math.prod(lead)) if lead else 1

    out_dtype = jnp.dtype(x.dtype)
    cdtype = jnp.dtype(compute_dtype) if compute_dtype is not None else jnp.dtype(w_kn.dtype)
    cd_size = cdtype.itemsize
    out_size = out_dtype.itemsize
    use_scratch = out_dtype != jnp.dtype(jnp.float32)

    # Casts: weight should already be in the compute dtype (prep-time), so in
    # the common case only the (small) activation cast can happen here.
    if x.dtype != cdtype:
        x = x.astype(cdtype)
    if w_kn.dtype != cdtype:
        w_kn = w_kn.astype(cdtype)  # fallback; prefer pre-casting at init time

    x2 = x.reshape(M, K)
    if bias is None:
        b2 = jnp.zeros((1, N), dtype=jnp.float32)
    else:
        b2 = bias.reshape(1, N).astype(jnp.float32)

    # ---- generation-aware tile caps, clamped to a VMEM budget ----
    vmem_cap = _vmem_capacity_bytes()
    tm_cap, tn_cap, tk_cap = _default_tile_caps(cd_size, vmem_cap)
    if tm is not None:
        tm_cap = tm
    if tn is not None:
        tn_cap = tn
    if tk is not None:
        tk_cap = tk
    budget = min(int(vmem_cap * 0.7), 100 * _MIB)
    while (_tile_footprint_bytes(tm_cap, tn_cap, tk_cap, cd_size, out_size,
                                 use_scratch) > budget
           and max(tm_cap, tn_cap, tk_cap) > 256):
        if tn_cap >= max(tm_cap, tk_cap):
            tn_cap //= 2
        elif tk_cap >= tm_cap:
            tk_cap //= 2
        else:
            tm_cap //= 2

    # ---- effective tiles ----
    sub = _sublane(cdtype)
    # M: never padded; full-dim block if it fits, otherwise capped tiles with
    # a ragged last block (OOB rows are dropped on output writeback).
    tm_eff = M if M <= tm_cap else tm_cap
    grid_m = pl.cdiv(M, tm_eff)

    tn_eff, N_pad = _pick_tile(N, tn_cap)
    tk_eff, K_pad = _pick_tile(K, tk_cap)
    grid_n = N_pad // tn_eff
    grid_k = K_pad // tk_eff

    # v7x has 2 TensorCores sharded over "parallel" grid axes: make sure at
    # least one parallel axis has >= 2 blocks for small problems.
    if grid_m == 1 and grid_n == 1:
        if tn_eff % 256 == 0:
            tn_eff //= 2
            grid_n = N_pad // tn_eff
        elif M >= 2 * sub:
            tm_eff = _round_up(pl.cdiv(M, 2), sub)
            grid_m = pl.cdiv(M, tm_eff)

    # ---- zero-pad fallback (rare: only when K or N have no 128-divisor) ----
    # For production shapes keep K, N multiples of 128 (or pre-pad the weight
    # at init time) so this never runs in the hot path.
    if K_pad != K:
        x2 = jnp.pad(x2, ((0, 0), (0, K_pad - K)))
        w_kn = jnp.pad(w_kn, ((0, K_pad - K), (0, 0)))
    if N_pad != N:
        w_kn = jnp.pad(w_kn, ((0, 0), (0, N_pad - N)))
        b2 = jnp.pad(b2, ((0, 0), (0, N_pad - N)))

    grid = (grid_m, grid_n, grid_k)

    # ---- VMEM limit from the real tile footprint ----
    footprint = _tile_footprint_bytes(tm_eff, tn_eff, tk_eff, cd_size,
                                      out_size, use_scratch)
    vmem_limit = int(min(vmem_cap - 2 * _MIB,
                         max(footprint + 8 * _MIB, 32 * _MIB)))

    # ---- cost estimate with real streaming traffic ----
    cost = pl.CostEstimate(
        flops=2 * M * K_pad * N_pad,
        transcendentals=0,
        bytes_accessed=int(grid_n * M * K_pad * cd_size        # x read per N tile
                           + grid_m * K_pad * N_pad * cd_size  # W read per M tile
                           + N_pad * 4                          # bias
                           + M * N_pad * out_size),             # output
    )

    kernel = _linear_kernel_acc if use_scratch else _linear_kernel_f32out
    scratch = ([pltpu.VMEM((tm_eff, tn_eff), jnp.float32)]
               if use_scratch else [])

    out = pl.pallas_call(
        kernel,
        out_shape=jax.ShapeDtypeStruct((M, N_pad), out_dtype),
        grid_spec=pltpu.PrefetchScalarGridSpec(
            num_scalar_prefetch=0,
            grid=grid,
            in_specs=[
                pl.BlockSpec((tm_eff, tk_eff), lambda i, j, k: (i, k)),  # x
                pl.BlockSpec((tk_eff, tn_eff), lambda i, j, k: (k, j)),  # W
                pl.BlockSpec((1, tn_eff), lambda i, j, k: (0, j)),       # bias
            ],
            out_specs=pl.BlockSpec((tm_eff, tn_eff), lambda i, j, k: (i, j)),
            scratch_shapes=scratch,
        ),
        compiler_params=pltpu.CompilerParams(
            dimension_semantics=("parallel", "parallel", "arbitrary"),
            vmem_limit_bytes=vmem_limit,
        ),
        cost_estimate=cost,
    )(x2, w_kn, b2)

    if N_pad != N:
        out = out[:, :N]
    return out.reshape(*lead, N)


def init_linear_params(key, in_features, out_features, bias=True, *,
                       compute_dtype=jnp.float32):
    """xavier_uniform_ weight + zero bias (PyTorch nn.Linear semantics).

    Returns (weight_nk_f32, w_kn, bias).  The weight handed to the kernel is
    transposed to (K, N) AND cast to `compute_dtype` exactly once here, so no
    per-call transpose/cast passes touch HBM."""
    bound = math.sqrt(6.0 / (in_features + out_features))
    weight_nk = jax.random.uniform(
        key, (out_features, in_features), dtype=jnp.float32,
        minval=-bound, maxval=bound)                 # PyTorch (N, K) layout
    w_kn = weight_nk.T.astype(compute_dtype)         # transpose + cast ONCE
    b = jnp.zeros((out_features,), dtype=jnp.float32) if bias else None
    return weight_nk, w_kn, b


if __name__ == "__main__":
    key = jax.random.PRNGKey(0)
    k_x, k_w = jax.random.split(key)

    batch, seq, in_features, out_features = 2, 8, 32, 64
    x = jax.random.normal(k_x, (batch, seq, in_features), dtype=jnp.float32)

    # ---- f32 path (direct-accumulate kernel), tight check ----
    weight_nk, w_kn, bias = init_linear_params(
        k_w, in_features, out_features, bias=True)
    y = jax.block_until_ready(pallas_linear(x, w_kn, bias))
    y_ref = x @ weight_nk.T + bias
    assert y.shape == (batch, seq, out_features)
    assert jnp.allclose(y, y_ref, atol=1e-5, rtol=1e-5)

    # ---- bf16 MXU path (f32-scratch kernel), checked against an exact
    #      bf16-input / f32-accumulate reference ----
    _, w_kn_bf16, _ = init_linear_params(
        k_w, in_features, out_features, bias=True, compute_dtype=jnp.bfloat16)
    x_bf16 = x.astype(jnp.bfloat16)
    y_bf16 = jax.block_until_ready(pallas_linear(x_bf16, w_kn_bf16, bias))
    y_ref_bf16 = x_bf16.astype(jnp.float32) @ w_kn_bf16.astype(jnp.float32) + bias
    assert y_bf16.shape == (batch, seq, out_features)
    assert jnp.allclose(y_bf16.astype(jnp.float32), y_ref_bf16,
                        atol=2e-2, rtol=2e-2)

    print("KERNEL_OK")
</pallas_src>

<mosaic_0001>
module attributes {stable_mosaic.version = 11 : i64} {
  func.func @_linear_kernel_f32out(%arg0: i32, %arg1: i32, %arg2: i32, %arg3: memref<8x32xf32, #tpu.memory_space<vmem>>, %arg4: memref<32x64xf32, #tpu.memory_space<vmem>>, %arg5: memref<1x64xf32, #tpu.memory_space<vmem>>, %arg6: memref<8x64xf32, #tpu.memory_space<vmem>>) attributes {dimension_semantics = [#tpu.dimension_semantics<parallel>, #tpu.dimension_semantics<parallel>, #tpu.dimension_semantics<arbitrary>], iteration_bounds = array<i64: 2, 1, 1>, scalar_prefetch = 0 : i64, scratch_operands = 0 : i64, tpu.core_type = #tpu.core_type<tc>, window_params = [{transform_indices = @transform_0, window_bounds = array<i64: 8, 32>}, {transform_indices = @transform_1, window_bounds = array<i64: 32, 64>}, {transform_indices = @transform_2, window_bounds = array<i64: 1, 64>}, {transform_indices = @transform_3, window_bounds = array<i64: 8, 64>}]} {
    %c0_i32 = arith.constant 0 : i32
    %0 = arith.cmpi eq, %arg2, %c0_i32 : i32
    %1 = arith.extui %0 : i1 to i32
    %c0_i32_0 = arith.constant 0 : i32
    %2 = arith.cmpi ne, %1, %c0_i32_0 : i32
    scf.if %2 {
      %c0_8 = arith.constant 0 : index
      %c0_9 = arith.constant 0 : index
      %9 = vector.load %arg5[%c0_8, %c0_9] : memref<1x64xf32, #tpu.memory_space<vmem>>, vector<1x64xf32>
      %10 = vector.shape_cast %9 : vector<1x64xf32> to vector<1x64xf32>
      %11 = vector.broadcast %10 : vector<1x64xf32> to vector<8x64xf32>
      %c0_10 = arith.constant 0 : index
      %c0_11 = arith.constant 0 : index
      %12 = vector.load %arg6[%c0_10, %c0_11] : memref<8x64xf32, #tpu.memory_space<vmem>>, vector<8x64xf32>
      tpu.vector_store %arg6[%c0_10, %c0_11], %11 {strides = array<i32>} : memref<8x64xf32, #tpu.memory_space<vmem>>, vector<8x64xf32>,
    } else {
    }
    %c0 = arith.constant 0 : index
    %c0_1 = arith.constant 0 : index
    %3 = vector.load %arg6[%c0, %c0_1] : memref<8x64xf32, #tpu.memory_space<vmem>>, vector<8x64xf32>
    %c0_2 = arith.constant 0 : index
    %c0_3 = arith.constant 0 : index
    %4 = vector.load %arg3[%c0_2, %c0_3] : memref<8x32xf32, #tpu.memory_space<vmem>>, vector<8x32xf32>
    %c0_4 = arith.constant 0 : index
    %c0_5 = arith.constant 0 : index
    %5 = vector.load %arg4[%c0_4, %c0_5] : memref<32x64xf32, #tpu.memory_space<vmem>>, vector<32x64xf32>
    %cst = arith.constant dense<0.000000e+00> : vector<8x64xf32>
    %6 = tpu.matmul %4, %5, %cst {dimension_numbers = #tpu.dot_dimension_numbers<[1], [0], [0], [1], [0, 0, 1, 1], [], []>} : vector<8x32xf32>, vector<32x64xf32>, vector<8x64xf32> -> vector<8x64xf32>
    %7 = arith.addf %3, %6 : vector<8x64xf32>
    %c0_6 = arith.constant 0 : index
    %c0_7 = arith.constant 0 : index
    %8 = vector.load %arg6[%c0_6, %c0_7] : memref<8x64xf32, #tpu.memory_space<vmem>>, vector<8x64xf32>
    tpu.vector_store %arg6[%c0_6, %c0_7], %7 {strides = array<i32>} : memref<8x64xf32, #tpu.memory_space<vmem>>, vector<8x64xf32>,
    return
  }
  func.func @transform_0(%arg0: i32, %arg1: i32, %arg2: i32) -> (i32, i32) {
    %c0_i32 = arith.constant 0 : i32
    return %arg0, %arg2 : i32, i32
  }
  func.func @transform_1(%arg0: i32, %arg1: i32, %arg2: i32) -> (i32, i32) {
    %c0_i32 = arith.constant 0 : i32
    return %arg2, %arg1 : i32, i32
  }
  func.func @transform_2(%arg0: i32, %arg1: i32, %arg2: i32) -> (i32, i32) {
    %c0_i32 = arith.constant 0 : i32
    %c0_i32_0 = arith.constant 0 : i32
    return %c0_i32, %arg1 : i32, i32
  }
  func.func @transform_3(%arg0: i32, %arg1: i32, %arg2: i32) -> (i32, i32) {
    %c0_i32 = arith.constant 0 : i32
    return %arg0, %arg1 : i32, i32
  }
}

</mosaic_0001>

<bundles_post_ra>
// kernel: tpu_custom_call.1
= control target key start
LH: loop header
LB: loop body
LE: loop exit
PB: predicated region body
PF: predicated region fallthrough
CT: control target
= control target key end

     0   :  { %8 = vsyncpa [#allocation3], 0  ;;  %s836_s0 = inlined_call_operand.hbm [shape: f32[16,32], index: 0, kind: input, shape index: {}]   ;;  %s837_s1 = inlined_call_operand.hbm [shape: f32[32,64], index: 1, kind: input, shape index: {}]   ;;  %s838_s2 = inlined_call_operand.vmem [shape: f32[1,64], index: 2, kind: input, shape index: {}]   ;;  %s839_s3 = inlined_call_operand.hbm [shape: f32[16,64], index: 3, kind: output, shape index: {}]  }
   0x1   :  { %10 = vsyncpa [#allocation3 + $0x1], 0 }
   0x2   :  { %11 = vsyncpa [#allocation6], 0 }
   0x3   :  { %12 = vsyncpa [#allocation4], 0 }
   0x4   :  { %14 = vsyncpa [#allocation4 + $0x1], 0  ;;  %s688_s12 = smov 0   ;;  %s690_s13 = smov 0  }
   0x5   :  { %s692_s14 = smov 0   ;;  %s694_s15 = smov 0  }
   0x6   :  { %s696_s16 = smov 0   ;;  %s698_s17 = smov 0  }
   0x7 LB: > { %s424_s18 = sadd.s32 4294967295, %s663_s17   ;;  %p426_p0 = scmp.ge.s32.totalorder %s663_s17, 1  ;;  %s663_s17 = sphi %s698_s17, %s20_s17   ;;  %s659_s16 = sphi %s696_s16, %s850_s16   ;;  %s655_s15 = sphi %s694_s15, %s849_s15   ;;  %s651_s14 = sphi %s692_s14, %s848_s14   ;;  %s647_s13 = sphi %s690_s13, %s847_s13   ;;  %s643_s12 = sphi %s688_s12, %s846_s12  }
   0x8   : > { %p720_p1 = scmp.eq.s32.totalorder %s424_s18, 0  ;;  %p154_p2 = scmp.lt.s32.totalorder %s663_s17, 3 }
   0x9   : > { %s169_s22 = sshll.u32 %s837_s1, 4  ;;  %s665_s24 = smov [#allocation5]   ;;  %s170_s22 = int_to_ptr.hbm [resolvable:$true] %s169_s22 }
   0xa   : > { %p728_p3 = pnand %p426_p0, %p154_p2  ;;  %s171_s25 = sshll.u32 %s665_s24, 4  ;;  %s172_s25 = int_to_ptr.vmem [resolvable:$true] %s171_s25 }
   0xb   : > { %p429_p6 = scmp.ge.s32.totalorder %s663_s17, 2  ;;  %s666_s26 = smov 128  }
   0xc   : > { %p449_p4 = pneg %p728_p3  ;;  %s667_s27 = smov 8  }
   0xd   : > { %s425_s28 = sadd.s32 4294967294, %s663_s17   ;;  %s39_s29 = sadd.s32 1, %s659_s16 }
   0xe   : > { %p450_p5 = pnand %p449_p4, %p720_p1  ;;  %s48_s30 = sadd.s32 1, %s651_s14 }
   0xf   : > { %p41_p7 = scmp.ge.s32.totalorder %s39_s29, 2  ;;  %p55_p8 = scmp.ne.s32.totalorder %s651_s14, %s647_s13 }
  0x10   : > { %452 = dma.hbm_to_vmem [thread:$0]  (!%p450_p5), %s170_s22, 512, %s172_s25, [#allocation6], %s666_s26, %s666_s26, %s667_s27  }
  0x11   : > { %p56_p9 = scmp.eq.s32.totalorder %s663_s17, 0  ;;  %p61_p10 = scmp.ne.s32.totalorder %s647_s13, %s643_s12 }
  0x12   : > { %s852_s29 = smov (%p41_p7, %s39_s29), 0  ;;  %p141_p13 = scmp.eq.s32.totalorder %s424_s18, 1 }
  0x13   : > { %p747_p11 = por %p56_p9, %p55_p8  ;;  %p753_p12 = por %p720_p1, %p61_p10 }
  0x14   : > { %s43_s6 = ssub.s32 %s659_s16, %s852_s29  ;;  %p147_p2 = scmp.eq.s32.totalorder %s425_s28, 1 }
  0x15   : > { %p46_p0 = scmp.eq.s32.totalorder %s43_s6, 0  ;;  %p759_p4 = por %p141_p13, %p55_p8 }
  0x16   : > { %p462_p5 = scmp.lt.s32.totalorder %s663_s17, 2  ;;  %p767_p7 = por %p147_p2, %p61_p10 }
  0x17   : > { %s765_s8 = scalar_select %p46_p0, %s651_s14, %s48_s30  }
  0x18   : > { %s191_s10 = sand.u32 1, %s651_s14   ;;  %s431_s20 = sshll.u32 %s659_s16, 3 }
  0x19   : > { %s430_s11 = sshll.u32 %s191_s10, 3  ;;  %s200_s18 = scalar_lea.hbm %s836_s0, %s431_s20 }
  0x1a   : > { %s195_s24 = scalar_lea.vmem [#allocation2], %s430_s11  ;;  %s202_s26 = sshll.u32 %s200_s18, 4  ;;  %s203_s26 = int_to_ptr.hbm [resolvable:$true] %s202_s26 }
  0x1b   : > { %s204_s25 = sshll.u32 %s195_s24, 4  ;;  %p454_p8 = pnand %p462_p5, %p747_p11  ;;  %s205_s25 = int_to_ptr.vmem [resolvable:$true] %s204_s25 }
  0x1c   : > { %s192_s27 = scalar_lea.sflag [#allocation3], %s191_s10  ;;  %213 = sbr.rel (%p728_p3) target bundleno = 175 (0xaf), region = 32 }
  0x1d   : > { %456 = dma.hbm_to_vmem [thread:$0]  (!%p454_p8), %s203_s26, 128, %s205_s25, %s192_s27  }
  0x1e   : > { %s781_s28 = sand.u32 (!%p728_p3), 1, %s647_s13  }
  0x1f   : > { %s433_s30 = sshll.u32 (!%p728_p3), %s781_s28, 3  ;;  %s216_s6 = scalar_lea.sflag (!%p728_p3), [#allocation3], %s781_s28 }
  0x20   : > { %s219_s11 = scalar_lea.vmem (!%p728_p3), [#allocation2], %s433_s30 }
  0x21   : > { %630 = dma.done.wait (%p753_p12), %s216_s6, 128  }
  0x22   : > { %632 = vsyncadd (%p753_p12), %s216_s6, 4294967168 }
  0x23   : > { %634 = dma.done.wait (%p720_p1), [#allocation6], 512  }
  0x24   : > { %636 = vsyncadd (%p720_p1), [#allocation6], 4294966784  ;;  %v270_v0 = vld [vmem:[#allocation5 + $0x18] sm:$0xff]  ;;  %v269_v1 = vld [vmem:[#allocation5 + $0x10] sm:$0xff]  ;;  %vm263_vm0 = vcmask 523264   ;;  %s250_s5 = scalar_lea.vmem [#allocation7], %s433_s30 }
  0x25   : > { %287 = vmatpush.msra.mxu0 %v270_v0  ;;  %v268_v2 = vld [vmem:[#allocation5 + $0x8] sm:$0xff]  ;;  %v516_v3 = vld [vmem:[%s838_s2] ss:$0 sm:$0xff]  ;;  %v267_v4 = vld [vmem:[#allocation5] sm:$0xff]  ;;  %vm271_vm1 = vcmask 261120   ;;  %s438_s19 = sshll.u32 %s655_s15, 3 }
  0x26   : > { %264 = vst.msk [vmem:[%s250_s5] sm:$0xff] %vm263_vm0, %v516_v3  ;;  %v266_v5 = vld [vmem:[%s219_s11] sm:$0xff]  ;;  %s310_s21 = scalar_lea.hbm %s839_s3, %s438_s19  ;;  %s312_s22 = sshll.u32 %s250_s5, 4  ;;  %s313_s22 = int_to_ptr.vmem [resolvable:$true] %s312_s22 }
  0x27   : > { %288 = vmatpush.msra.mxu0 %v269_v1  ;;  %s314_s18 = sshll.u32 %s310_s21, 4  ;;  %s299_s24 = scalar_lea.sflag [#allocation4], %s781_s28  ;;  %s315_s18 = int_to_ptr.hbm [resolvable:$true] %s314_s18 }
  0x28   : > { %s591_s25 = sshra.s32 %s315_s18, 4  ;;  %s597_s30 = scalar_lea.hbm %s839_s3, 16  ;;  %s592_s25 = int_to_ptr.hbm [resolvable:$true] %s591_s25 }
  0x29   : > { %289 = vmatpush.msra.mxu0 %v268_v2  ;;  %s593_s26 = scalar_lea.hbm %s592_s25, 8  ;;  %p598_p10 = scmp.lt.s32.totalorder %s592_s25, %s839_s3 }
  0x2a   : > { %p594_p1 = scmp.ne.s32.totalorder %s592_s25, %s593_s26  ;;  %p599_p11 = scmp.lt.s32.totalorder %s597_s30, %s593_s26 }
  0x2b   : > { %290 = vmatpush.msra.mxu0 %v267_v4 }
  0x2c   : > { %436 = vmatmul.msk.f32.vlgmr.msra.gmra.mxu0 %vm271_vm1, %v266_v5  ;;  %p595_p3 = pnand %p594_p1, %p759_p4  ;;  %p600_p12 = por %p599_p11, %p598_p10 }
  0x2d   : > { %v265_v6 = vld [vmem:[%s250_s5] sm:$0xff] }
  0x2e   : > { %p596_p9 = pneg %p595_p3 }
  0x30   : > { %p601_p13 = pnand %p600_p12, %p596_p9 }
  0xa9   : > { %v292_v7 = vpop.f32.mrf.mxu0 }
  0xaa   : > { %v295_v8 = vadd.f32 %v292_v7, %v265_v6 }
  0xac   : > { %297 = vst.msk [vmem:[%s250_s5] sm:$0xff] %vm263_vm0, %v295_v8 }
  0xad   : > { %604 = shalt.err (!%p601_p13)
}
  0xae   : > { %447 = dma.vmem_to_hbm [thread:$0]  (%p759_p4), %s313_s22, 128, %s315_s18, %s299_s24  }
  0xaf PF: > { %s326_s28 = sand.u32 1, %s643_s12   ;;  %p458_p0 = pnand %p429_p6, %p767_p7 }
  0xb0   : > { %s327_s23 = scalar_lea.sflag [#allocation4], %s326_s28 }
  0xb1   : > { %p459_p2 = pneg %p458_p0 }
  0xb3   : > { %638 = dma.done.wait (%p459_p2), %s327_s23, 128  }
  0xb4   : > { %640 = vsyncadd (%p459_p2), %s327_s23, 4294967168  ;;  %s20_s17 = sadd.s32 1, %s663_s17   ;;  %s846_s12 = smov %s647_s13 }
  0xb5   : > { %p17_p5 = scmp.ge.s32.totalorder %s20_s17, 4   ;;  %s847_s13 = smov %s651_s14 }
  0xb6   : > { %s848_s14 = smov %s765_s8  ;;  %s849_s15 = smov %s659_s16 }
  0xb7   : > { %s850_s16 = smov %s852_s29  ;;  %19 = sbr.rel (!%p17_p5) target bundleno = 7 (0x7), region = 89 }
  0xbc   :  { %333 = vsyncpa [#allocation3], 1 }
  0xbd   :  { %335 = vsyncpa [#allocation3 + $0x1], 1 }
  0xbe   :  { %336 = vsyncpa [#allocation6], 1 }
  0xbf   :  { %337 = vsyncpa [#allocation4], 1 }
  0xc0   :  { %339 = vsyncpa [#allocation4 + $0x1], 1 }

</bundles_post_ra>
